<compile_context>
chip_gen: v5e
topology: v5e:2x2
jax: 0.10.0
libtpu: 0.0.40
codegen_flags: <defaults>
</compile_context>

<pallas_src>
import jax
import jax.numpy as jnp
from jax.experimental import pallas as pl
from jax.experimental.pallas import tpu as pltpu


def _round_up(x, m):
    return ((x + m - 1) // m) * m


def _vmem_budget_bytes():
    """Usable scoped-VMEM budget: 75% of physical (v7x=48MiB, v5e/v6e=96MiB)."""
    try:
        cap = int(pltpu.get_tpu_info().vmem_capacity_bytes)
    except Exception:
        cap = 64 * 1024 * 1024  # conservative: v7x has 64 MiB per TensorCore
    return max(32 * 1024 * 1024, (cap * 3) // 4)


# ----------------------------- kernels --------------------------------------


def _decoder_resident_kernel(z_ref, w1_ref, b1_ref, w2_ref, b2_ref, o_ref):
    # z_ref : [TM, zdim]          w1_ref: [zdim, hidden_p]   b1_ref: [1, hidden_p]
    # w2_ref: [hidden_p, image_p] b2_ref: [1, image_p]       o_ref : [TM, image_p]
    # Both layers in one grid step; W1/b1/W2/b2 are resident (index_map == (0,0)).
    wdt = w1_ref.dtype
    h = jnp.dot(z_ref[...].astype(wdt), w1_ref[...],
                preferred_element_type=jnp.float32)
    h = jnp.tanh(h + b1_ref[...].astype(jnp.float32))
    x = jnp.dot(h.astype(wdt), w2_ref[...], preferred_element_type=jnp.float32)
    o_ref[...] = jnp.tanh(x + b2_ref[...].astype(jnp.float32)).astype(o_ref.dtype)


def _hidden_kernel(z_ref, w1_ref, b1_ref, h_ref):
    # h = tanh(z @ W1 + b1), stored directly in the weight dtype.
    h = jnp.dot(z_ref[...].astype(w1_ref.dtype), w1_ref[...],
                preferred_element_type=jnp.float32)
    h_ref[...] = jnp.tanh(h + b1_ref[...].astype(jnp.float32)).astype(h_ref.dtype)


def _output_kernel(h_ref, w2_ref, b2_ref, o_ref):
    # out = tanh(h @ W2 + b2); h already in the weight dtype (no per-step cast).
    x = jnp.dot(h_ref[...], w2_ref[...], preferred_element_type=jnp.float32)
    o_ref[...] = jnp.tanh(x + b2_ref[...].astype(jnp.float32)).astype(o_ref.dtype)


# --------------------------- parameter prep ---------------------------------


def prepare_decoder_params(w1, b1, w2, b2, dtype=jnp.bfloat16, pad_multiple=256):
    """One-time parameter prep (keep OUTSIDE the per-step hot path).

    Input layout follows PyTorch nn.Linear:
      w1: [hidden, zdim], b1: [hidden], w2: [image_dim, hidden], b2: [image_dim]

    Returns lane-aligned, pre-transposed params:
      w1t: [zdim, hidden_p], b1p: [1, hidden_p],
      w2t: [hidden_p, image_p], b2p: [1, image_p], image_dim (for un-padding)
    hidden_p / image_p are rounded up to `pad_multiple` (default 256: fills the
    2x256x256 MXU on v6e/v7x; still optimal-or-harmless on v5e).  Zero padding
    is exact: padded hidden columns produce tanh(0)=0 and meet zero W2 rows;
    padded image columns are sliced off.
    """
    assert pad_multiple % 128 == 0
    hidden, zdim = w1.shape
    image_dim = w2.shape[0]
    if dtype is not None:
        w1, b1, w2, b2 = (a.astype(dtype) for a in (w1, b1, w2, b2))

    hidden_p = _round_up(hidden, pad_multiple)
    image_p = _round_up(image_dim, pad_multiple)

    w1t = jnp.zeros((zdim, hidden_p), w1.dtype).at[:, :hidden].set(w1.T)
    b1p = jnp.zeros((1, hidden_p), b1.dtype).at[:, :hidden].set(b1[None, :])
    w2t = jnp.zeros((hidden_p, image_p), w2.dtype).at[:hidden, :image_dim].set(w2.T)
    b2p = jnp.zeros((1, image_p), b2.dtype).at[:, :image_dim].set(b2[None, :])
    return w1t, b1p, w2t, b2p, image_dim


# ------------------------------- forward ------------------------------------


def _pick_tn(image_p, block_n):
    """Largest lane-dense tile width (prefer 256-multiples) dividing image_p."""
    for lane_mult in (256, 128):
        start = max(lane_mult, (min(block_n, image_p) // lane_mult) * lane_mult)
        for cand in range(start, lane_mult - 1, -lane_mult):
            if image_p % cand == 0:
                return cand
    return image_p


def decoder_forward(z, w1t, b1p, w2t, b2p, image_dim, *,
                    block_m=256, block_n=512, w2_resident=None):
    """z: [B, zdim]; params from prepare_decoder_params. Returns [B, image_dim]."""
    assert block_m % 8 == 0 and block_n % 128 == 0
    B, zdim = z.shape
    hidden_p = w1t.shape[1]
    image_p = w2t.shape[1]
    assert w1t.shape[0] == zdim and w2t.shape[0] == hidden_p
    assert hidden_p % 128 == 0 and image_p % 128 == 0

    # --- batch (M) tiling: full batch as one tile if it fits, else pad to TM ---
    if B <= block_m:
        tm, b_pad = B, B
        z_p = z
    else:
        tm = block_m
        b_pad = _round_up(B, tm)
        z_p = jnp.pad(z, ((0, b_pad - B), (0, 0))) if b_pad != B else z
    grid_m = b_pad // tm

    z_itemsize = jnp.dtype(z.dtype).itemsize
    w_itemsize = jnp.dtype(w2t.dtype).itemsize
    out_itemsize = z_itemsize
    budget = _vmem_budget_bytes()

    # Conservative double-buffered VMEM estimate for the resident-W2 path.
    resident_est = (
        2 * tm * zdim * z_itemsize            # z tiles (double buffered)
        + 2 * (zdim + 1) * hidden_p * w_itemsize   # W1 + b1 (resident)
        + 2 * (hidden_p + 1) * image_p * w_itemsize  # W2 + b2 (resident)
        + 2 * tm * image_p * out_itemsize     # output tiles
        + 2 * tm * hidden_p * 4               # f32 h intermediate inside kernel
    )
    use_resident = resident_est <= budget if w2_resident is None else w2_resident

    if use_resident:
        out = pl.pallas_call(
            _decoder_resident_kernel,
            out_shape=jax.ShapeDtypeStruct((b_pad, image_p), z.dtype),
            grid_spec=pltpu.PrefetchScalarGridSpec(
                num_scalar_prefetch=0,
                grid=(grid_m,),
                in_specs=[
                    pl.BlockSpec((tm, zdim), lambda i: (i, 0)),          # z tile
                    pl.BlockSpec((zdim, hidden_p), lambda i: (0, 0)),    # W1 resident
                    pl.BlockSpec((1, hidden_p), lambda i: (0, 0)),       # b1 resident
                    pl.BlockSpec((hidden_p, image_p), lambda i: (0, 0)), # W2 resident
                    pl.BlockSpec((1, image_p), lambda i: (0, 0)),        # b2 resident
                ],
                out_specs=pl.BlockSpec((tm, image_p), lambda i: (i, 0)),
            ),
            compiler_params=pltpu.CompilerParams(
                dimension_semantics=("parallel",),
                vmem_limit_bytes=int(budget),
            ),
        )(z_p, w1t, b1p, w2t, b2p)
        return out[:B, :image_dim]

    # ---------- fallback: W2 too large for VMEM -> read W2 exactly once ------
    # 1) h = tanh(z @ W1 + b1) over the whole padded batch, in the weight dtype.
    h = pl.pallas_call(
        _hidden_kernel,
        out_shape=jax.ShapeDtypeStruct((b_pad, hidden_p), w1t.dtype),
        grid_spec=pltpu.PrefetchScalarGridSpec(
            num_scalar_prefetch=0,
            grid=(grid_m,),
            in_specs=[
                pl.BlockSpec((tm, zdim), lambda i: (i, 0)),
                pl.BlockSpec((zdim, hidden_p), lambda i: (0, 0)),
                pl.BlockSpec((1, hidden_p), lambda i: (0, 0)),
            ],
            out_specs=pl.BlockSpec((tm, hidden_p), lambda i: (i, 0)),
        ),
        compiler_params=pltpu.CompilerParams(
            dimension_semantics=("parallel",),
            vmem_limit_bytes=int(budget),
        ),
    )(z_p, w1t, b1p)

    # 2) out = tanh(h @ W2 + b2), grid (j outer, i inner): the W2 block index
    #    is constant across the inner batch axis, so each W2 tile is DMA'd once.
    tn = _pick_tn(image_p, block_n)
    grid_n = image_p // tn
    out = pl.pallas_call(
        _output_kernel,
        out_shape=jax.ShapeDtypeStruct((b_pad, image_p), z.dtype),
        grid_spec=pltpu.PrefetchScalarGridSpec(
            num_scalar_prefetch=0,
            grid=(grid_n, grid_m),
            in_specs=[
                pl.BlockSpec((tm, hidden_p), lambda j, i: (i, 0)),  # h tile
                pl.BlockSpec((hidden_p, tn), lambda j, i: (0, j)),  # W2: once per j
                pl.BlockSpec((1, tn), lambda j, i: (0, j)),         # b2: once per j
            ],
            out_specs=pl.BlockSpec((tm, tn), lambda j, i: (i, j)),
        ),
        compiler_params=pltpu.CompilerParams(
            dimension_semantics=("parallel", "arbitrary"),
            vmem_limit_bytes=int(budget),
        ),
    )(h, w2t, b2p)
    return out[:B, :image_dim]


# ------------------------------- init / test --------------------------------


def init_decoder_params(key, zdim, hidden_dim, image_dim, dtype=jnp.float32):
    """Matches _init_weights: Linear weights ~ N(0, 0.01), biases zero.
    Returned in PyTorch nn.Linear layout (out_features, in_features)."""
    k1, k2 = jax.random.split(key)
    w1 = 0.01 * jax.random.normal(k1, (hidden_dim, zdim), dtype=dtype)
    b1 = jnp.zeros((hidden_dim,), dtype=dtype)
    w2 = 0.01 * jax.random.normal(k2, (image_dim, hidden_dim), dtype=dtype)
    b2 = jnp.zeros((image_dim,), dtype=dtype)
    return w1, b1, w2, b2


def _ref_forward(z, w1, b1, w2, b2):
    return jnp.tanh(jnp.tanh(z @ w1.T + b1) @ w2.T + b2)


if __name__ == "__main__":
    key = jax.random.PRNGKey(0)
    k_params, k_z, k_rest = jax.random.split(key, 3)

    # --- Test 1: small shapes matching the module, f32 params (exact path) ---
    batch, zdim, hidden_dim, image_dim = 8, 8, 32, 64
    w1, b1, w2, b2 = init_decoder_params(k_params, zdim, hidden_dim, image_dim)
    z = jax.random.normal(k_z, (batch, zdim), dtype=jnp.float32)

    params = prepare_decoder_params(w1, b1, w2, b2, dtype=jnp.float32)
    out = jax.block_until_ready(decoder_forward(z, *params))
    ref = _ref_forward(z, w1, b1, w2, b2)
    assert out.shape == (batch, image_dim)
    assert jnp.allclose(out, ref, atol=2e-5, rtol=1e-5)

    # --- Test 2: bf16 weights (default), batch tiling, non-power-of-two image ---
    B2, zd2, hd2, id2 = 512, 16, 256, 784
    k1, k2, k3 = jax.random.split(k_rest, 3)
    w1b, b1b, w2b, b2b = init_decoder_params(k1, zd2, hd2, id2)
    z2 = jax.random.normal(k2, (B2, zd2), dtype=jnp.float32)

    params_bf16 = prepare_decoder_params(w1b, b1b, w2b, b2b)  # bf16 default
    out2 = jax.block_until_ready(
        decoder_forward(z2, *params_bf16, block_m=256))
    ref2 = _ref_forward(z2, w1b, b1b, w2b, b2b)
    assert out2.shape == (B2, id2)
    assert jnp.allclose(out2, ref2, atol=5e-3, rtol=5e-2)

    # --- Test 3: force the streamed-W2 fallback (W2 read exactly once) ---
    B3, zd3, hd3, id3 = 384, 8, 128, 768
    w1c, b1c, w2c, b2c = init_decoder_params(k1, zd3, hd3, id3)
    z3 = jax.random.normal(k3, (B3, zd3), dtype=jnp.float32)

    params_f32 = prepare_decoder_params(w1c, b1c, w2c, b2c, dtype=jnp.float32)
    out3 = jax.block_until_ready(
        decoder_forward(z3, *params_f32, block_m=128, block_n=256,
                        w2_resident=False))
    ref3 = _ref_forward(z3, w1c, b1c, w2c, b2c)
    assert out3.shape == (B3, id3)
    assert jnp.allclose(out3, ref3, atol=1e-4, rtol=1e-3)

    print("KERNEL_OK")
</pallas_src>

<mosaic_0001>
module attributes {stable_mosaic.version = 11 : i64} {
  func.func @_decoder_resident_kernel(%arg0: i32, %arg1: memref<8x8xf32, #tpu.memory_space<vmem>>, %arg2: memref<8x256xf32, #tpu.memory_space<vmem>>, %arg3: memref<1x256xf32, #tpu.memory_space<vmem>>, %arg4: memref<256x256xf32, #tpu.memory_space<vmem>>, %arg5: memref<1x256xf32, #tpu.memory_space<vmem>>, %arg6: memref<8x256xf32, #tpu.memory_space<vmem>>) attributes {dimension_semantics = [#tpu.dimension_semantics<parallel>], iteration_bounds = array<i64: 1>, scalar_prefetch = 0 : i64, scratch_operands = 0 : i64, tpu.core_type = #tpu.core_type<tc>, window_params = [{transform_indices = @transform_0, window_bounds = array<i64: 8, 8>}, {pipeline_mode = #tpu.pipeline_mode<synchronous>, transform_indices = @transform_1, window_bounds = array<i64: 8, 256>}, {pipeline_mode = #tpu.pipeline_mode<synchronous>, transform_indices = @transform_2, window_bounds = array<i64: 1, 256>}, {pipeline_mode = #tpu.pipeline_mode<synchronous>, transform_indices = @transform_3, window_bounds = array<i64: 256, 256>}, {pipeline_mode = #tpu.pipeline_mode<synchronous>, transform_indices = @transform_4, window_bounds = array<i64: 1, 256>}, {transform_indices = @transform_5, window_bounds = array<i64: 8, 256>}]} {
    %c0 = arith.constant 0 : index
    %c0_0 = arith.constant 0 : index
    %0 = vector.load %arg1[%c0, %c0_0] : memref<8x8xf32, #tpu.memory_space<vmem>>, vector<8x8xf32>
    %c0_1 = arith.constant 0 : index
    %c0_2 = arith.constant 0 : index
    %1 = vector.load %arg2[%c0_1, %c0_2] : memref<8x256xf32, #tpu.memory_space<vmem>>, vector<8x256xf32>
    %cst = arith.constant dense<0.000000e+00> : vector<8x256xf32>
    %2 = tpu.matmul %0, %1, %cst {dimension_numbers = #tpu.dot_dimension_numbers<[1], [0], [0], [1], [0, 0, 1, 1], [], []>} : vector<8x8xf32>, vector<8x256xf32>, vector<8x256xf32> -> vector<8x256xf32>
    %c0_3 = arith.constant 0 : index
    %c0_4 = arith.constant 0 : index
    %3 = vector.load %arg3[%c0_3, %c0_4] : memref<1x256xf32, #tpu.memory_space<vmem>>, vector<1x256xf32>
    %4 = vector.broadcast %3 : vector<1x256xf32> to vector<8x256xf32>
    %5 = arith.addf %2, %4 : vector<8x256xf32>
    %6 = math.tanh %5 : vector<8x256xf32>
    %c0_5 = arith.constant 0 : index
    %c0_6 = arith.constant 0 : index
    %7 = vector.load %arg4[%c0_5, %c0_6] : memref<256x256xf32, #tpu.memory_space<vmem>>, vector<256x256xf32>
    %cst_7 = arith.constant dense<0.000000e+00> : vector<8x256xf32>
    %8 = tpu.matmul %6, %7, %cst_7 {dimension_numbers = #tpu.dot_dimension_numbers<[1], [0], [0], [1], [0, 0, 1, 1], [], []>} : vector<8x256xf32>, vector<256x256xf32>, vector<8x256xf32> -> vector<8x256xf32>
    %c0_8 = arith.constant 0 : index
    %c0_9 = arith.constant 0 : index
    %9 = vector.load %arg5[%c0_8, %c0_9] : memref<1x256xf32, #tpu.memory_space<vmem>>, vector<1x256xf32>
    %10 = vector.broadcast %9 : vector<1x256xf32> to vector<8x256xf32>
    %11 = arith.addf %8, %10 : vector<8x256xf32>
    %12 = math.tanh %11 : vector<8x256xf32>
    %c0_10 = arith.constant 0 : index
    %c0_11 = arith.constant 0 : index
    %13 = vector.load %arg6[%c0_10, %c0_11] : memref<8x256xf32, #tpu.memory_space<vmem>>, vector<8x256xf32>
    tpu.vector_store %arg6[%c0_10, %c0_11], %12 {strides = array<i32>} : memref<8x256xf32, #tpu.memory_space<vmem>>, vector<8x256xf32>,
    return
  }
  func.func @transform_0(%arg0: i32) -> (i32, i32) {
    %c0_i32 = arith.constant 0 : i32
    %c0_i32_0 = arith.constant 0 : i32
    return %arg0, %c0_i32 : i32, i32
  }
  func.func @transform_1(%arg0: i32) -> (i32, i32) {
    %c0_i32 = arith.constant 0 : i32
    %c0_i32_0 = arith.constant 0 : i32
    %c0_i32_1 = arith.constant 0 : i32
    return %c0_i32, %c0_i32_0 : i32, i32
  }
  func.func @transform_2(%arg0: i32) -> (i32, i32) {
    %c0_i32 = arith.constant 0 : i32
    %c0_i32_0 = arith.constant 0 : i32
    %c0_i32_1 = arith.constant 0 : i32
    return %c0_i32, %c0_i32_0 : i32, i32
  }
  func.func @transform_3(%arg0: i32) -> (i32, i32) {
    %c0_i32 = arith.constant 0 : i32
    %c0_i32_0 = arith.constant 0 : i32
    %c0_i32_1 = arith.constant 0 : i32
    return %c0_i32, %c0_i32_0 : i32, i32
  }
  func.func @transform_4(%arg0: i32) -> (i32, i32) {
    %c0_i32 = arith.constant 0 : i32
    %c0_i32_0 = arith.constant 0 : i32
    %c0_i32_1 = arith.constant 0 : i32
    return %c0_i32, %c0_i32_0 : i32, i32
  }
  func.func @transform_5(%arg0: i32) -> (i32, i32) {
    %c0_i32 = arith.constant 0 : i32
    %c0_i32_0 = arith.constant 0 : i32
    return %arg0, %c0_i32 : i32, i32
  }
}

</mosaic_0001>

<bundles_post_ra>
// kernel: tpu_custom_call.1
= control target key start
LH: loop header
LB: loop body
LE: loop exit
PB: predicated region body
PF: predicated region fallthrough
CT: control target
= control target key end

     0   :  { %10 = vsyncpa [#allocation3], 0  ;;  %s506_s0 = inlined_call_operand.hbm [shape: f32[8,8], index: 0, kind: input, shape index: {}]   ;;  %s507_s1 = inlined_call_operand.hbm [shape: f32[8,256], index: 1, kind: input, shape index: {}]   ;;  %s508_s2 = inlined_call_operand.hbm [shape: f32[1,256], index: 2, kind: input, shape index: {}]   ;;  %s509_s3 = inlined_call_operand.hbm [shape: f32[256,256], index: 3, kind: input, shape index: {}]   ;;  %s510_s4 = inlined_call_operand.vmem [shape: f32[1,256], index: 4, kind: input, shape index: {}]   ;;  %s511_s5 = inlined_call_operand.hbm [shape: f32[8,256], index: 5, kind: output, shape index: {}]  }
   0x1   :  { %11 = vsyncpa [#allocation6], 0 }
   0x2   :  { %12 = vsyncpa [#allocation9], 0  ;;  %s30_s20 = sshll.u32 %s507_s1, 4  ;;  %s31_s20 = int_to_ptr.hbm [resolvable:$true] %s30_s20 }
   0x3   :  { %13 = vsyncpa [#allocation4], 0  ;;  %s451_s21 = smov [#allocation5]   ;;  %s19_s25 = sshll.u32 %s506_s0, 4  ;;  %s20_s25 = int_to_ptr.hbm [resolvable:$true] %s19_s25 }
   0x4   :  { %s32_s22 = sshll.u32 %s451_s21, 4  ;;  %s452_s26 = smov [#allocation2]   ;;  %s33_s22 = int_to_ptr.vmem [resolvable:$true] %s32_s22 }
   0x5   :  { %35 = dma.hbm_to_vmem [thread:$0]  %s31_s20, 256, %s33_s22, [#allocation6]  }
   0x6   :  { %s21_s27 = sshll.u32 %s452_s26, 4  ;;  %s41_s30 = sshll.u32 %s508_s2, 4  ;;  %s22_s27 = int_to_ptr.vmem [resolvable:$true] %s21_s27  ;;  %s42_s30 = int_to_ptr.hbm [resolvable:$true] %s41_s30 }
   0x7   :  { %24 = dma.hbm_to_vmem [thread:$0]  %s20_s25, 128, %s22_s27, [#allocation3]  }
   0x8   :  { %s51_s7 = sshll.u32 %s509_s3, 4  ;;  %s453_s8 = smov [#allocation7]   ;;  %s52_s7 = int_to_ptr.hbm [resolvable:$true] %s51_s7 }
   0x9   :  { %s43_s9 = sshll.u32 %s453_s8, 4  ;;  %s454_s0 = smov [#allocation8]   ;;  %s44_s9 = int_to_ptr.vmem [resolvable:$true] %s43_s9 }
   0xa   :  { %46 = dma.hbm_to_vmem [thread:$0]  %s42_s30, 32, %s44_s9, [#allocation6]  }
   0xb   :  { %s53_s10 = sshll.u32 %s454_s0, 4  ;;  %s455_s11 = smov 256   ;;  %s54_s10 = int_to_ptr.vmem [resolvable:$true] %s53_s10 }
   0xc   :  { %s456_s12 = smov 16  }
   0xd   :  { %59 = dma.hbm_to_vmem [thread:$0]  %s52_s7, 8192, %s54_s10, [#allocation9], %s455_s11, %s455_s11, %s456_s12  }
   0xe   :  { %443 = dma.done.wait [#allocation3], 128  }
   0xf   :  { %444 = vsyncadd [#allocation3], 4294967168 }
  0x10   :  { %445 = dma.done.wait [#allocation6], 288  }
  0x11   :  { %446 = vsyncadd [#allocation6], 4294967008 }
  0x12   :  { %447 = dma.done.wait [#allocation9], 8192  }
  0x13   :  { %448 = vsyncadd [#allocation9], 4294959104  ;;  %vm87_vm0 = vcmask 64512   ;;  %v79_v0 = vld [vmem:[#allocation5] sm:$0xff]  ;;  %v78_v1 = vld [vmem:[#allocation2] sm:$0xff]  ;;  %s457_s13 = smov [#allocation10]  }
  0x14   :  { %v80_v2 = vld [vmem:[#allocation5 + $0x8] sm:$0xff]  ;;  %106 = vmatpush.msra.mxu0 %v79_v0  ;;  %v161_v5 = vld [vmem:[#allocation8 + $0xe0] sm:$0xff]  ;;  %v162_v7 = vld [vmem:[#allocation8 + $0xe8] sm:$0xff]  ;;  %s292_s14 = sshll.u32 %s457_s13, 4  ;;  %s293_s14 = int_to_ptr.vmem [resolvable:$true] %s292_s14 }
  0x15   :  { %126 = vmatpush.msra.mxu1 %v80_v2  ;;  %v163_v3 = vld [vmem:[#allocation8 + $0xf0] sm:$0xff]  ;;  %v164_v4 = vld [vmem:[#allocation8 + $0xf8] sm:$0xff]  ;;  %306 = vmatmul.msk.f32.vlgmr.msra.gmra.mxu0 %vm87_vm0, %v78_v1  ;;  %v193_v9 = vld [vmem:[#allocation8 + $0x1e0] sm:$0xff] }
  0x16   :  { %307 = vmatmul.msk.f32.vlgmr.msra.gmra.mxu1 %vm87_vm0, %v78_v1  ;;  %v195_v6 = vld [vmem:[#allocation8 + $0x1f0] sm:$0xff]  ;;  %v196_v8 = vld [vmem:[#allocation8 + $0x1f8] sm:$0xff]  ;;  %203 = vmatpush.msra.mxu2 %v163_v3  ;;  %v194_v12 = vld [vmem:[#allocation8 + $0x1e8] sm:$0xff] }
  0x17   :  { %243 = vmatpush.msrb.mxu0 %v164_v4  ;;  %223 = vmatpush.msra.mxu3 %v195_v6  ;;  %v159_v10 = vld [vmem:[#allocation8 + $0xd0] sm:$0xff]  ;;  %v160_v11 = vld [vmem:[#allocation8 + $0xd8] sm:$0xff]  ;;  %v157_v15 = vld [vmem:[#allocation8 + $0xc0] sm:$0xff] }
  0x18   :  { %263 = vmatpush.msrb.mxu1 %v196_v8  ;;  %204 = vmatpush.msra.mxu2 %v161_v5  ;;  %v191_v13 = vld [vmem:[#allocation8 + $0x1d0] sm:$0xff]  ;;  %v192_v14 = vld [vmem:[#allocation8 + $0x1d8] sm:$0xff]  ;;  %v158_v16 = vld [vmem:[#allocation8 + $0xc8] sm:$0xff] }
  0x19   :  { %244 = vmatpush.msrb.mxu0 %v162_v7  ;;  %224 = vmatpush.msra.mxu3 %v193_v9  ;;  %v189_v17 = vld [vmem:[#allocation8 + $0x1c0] sm:$0xff]  ;;  %v190_v18 = vld [vmem:[#allocation8 + $0x1c8] sm:$0xff]  ;;  %v155_v19 = vld [vmem:[#allocation8 + $0xb0] sm:$0xff] }
  0x1a   :  { %264 = vmatpush.msrb.mxu1 %v194_v12  ;;  %205 = vmatpush.msra.mxu2 %v159_v10  ;;  %v156_v20 = vld [vmem:[#allocation8 + $0xb8] sm:$0xff]  ;;  %v187_v21 = vld [vmem:[#allocation8 + $0x1b0] sm:$0xff]  ;;  %v153_v23 = vld [vmem:[#allocation8 + $0xa0] sm:$0xff] }
  0x1b   :  { %245 = vmatpush.msrb.mxu0 %v160_v11  ;;  %225 = vmatpush.msra.mxu3 %v191_v13  ;;  %v188_v22 = vld [vmem:[#allocation8 + $0x1b8] sm:$0xff]  ;;  %v154_v24 = vld [vmem:[#allocation8 + $0xa8] sm:$0xff]  ;;  %v185_v25 = vld [vmem:[#allocation8 + $0x1a0] sm:$0xff] }
  0x1c   :  { %265 = vmatpush.msrb.mxu1 %v192_v14  ;;  %206 = vmatpush.msra.mxu2 %v157_v15  ;;  %v186_v26 = vld [vmem:[#allocation8 + $0x1a8] sm:$0xff]  ;;  %v151_v27 = vld [vmem:[#allocation8 + $0x90] sm:$0xff]  ;;  %v152_v28 = vld [vmem:[#allocation8 + $0x98] sm:$0xff] }
  0x1d   :  { %246 = vmatpush.msrb.mxu0 %v158_v16  ;;  %226 = vmatpush.msra.mxu3 %v189_v17  ;;  %v183_v29 = vld [vmem:[#allocation8 + $0x190] sm:$0xff]  ;;  %v184_v30 = vld [vmem:[#allocation8 + $0x198] sm:$0xff]  ;;  %v149_v31 = vld [vmem:[#allocation8 + $0x80] sm:$0xff] }
  0x1e   :  { %266 = vmatpush.msrb.mxu1 %v190_v18  ;;  %207 = vmatpush.msra.mxu2 %v155_v19  ;;  %v150_v32 = vld [vmem:[#allocation8 + $0x88] sm:$0xff]  ;;  %v181_v33 = vld [vmem:[#allocation8 + $0x180] sm:$0xff]  ;;  %v147_v35 = vld [vmem:[#allocation8 + $0x70] sm:$0xff] }
  0x1f   :  { %247 = vmatpush.msrb.mxu0 %v156_v20  ;;  %227 = vmatpush.msra.mxu3 %v187_v21  ;;  %v182_v34 = vld [vmem:[#allocation8 + $0x188] sm:$0xff]  ;;  %v148_v36 = vld [vmem:[#allocation8 + $0x78] sm:$0xff]  ;;  %v179_v37 = vld [vmem:[#allocation8 + $0x170] sm:$0xff] }
  0x20   :  { %267 = vmatpush.msrb.mxu1 %v188_v22  ;;  %208 = vmatpush.msra.mxu2 %v153_v23  ;;  %v180_v38 = vld [vmem:[#allocation8 + $0x178] sm:$0xff]  ;;  %v145_v39 = vld [vmem:[#allocation8 + $0x60] sm:$0xff]  ;;  %v146_v40 = vld [vmem:[#allocation8 + $0x68] sm:$0xff] }
  0x21   :  { %248 = vmatpush.msrb.mxu0 %v154_v24  ;;  %228 = vmatpush.msra.mxu3 %v185_v25  ;;  %v177_v41 = vld [vmem:[#allocation8 + $0x160] sm:$0xff]  ;;  %v178_v42 = vld [vmem:[#allocation8 + $0x168] sm:$0xff]  ;;  %v143_v43 = vld [vmem:[#allocation8 + $0x50] sm:$0xff] }
  0x22   :  { %268 = vmatpush.msrb.mxu1 %v186_v26  ;;  %209 = vmatpush.msra.mxu2 %v151_v27  ;;  %v144_v44 = vld [vmem:[#allocation8 + $0x58] sm:$0xff]  ;;  %v141_v45 = vld [vmem:[#allocation8 + $0x40] sm:$0xff]  ;;  %v175_v46 = vld [vmem:[#allocation8 + $0x150] sm:$0xff] }
  0x23   :  { %249 = vmatpush.msrb.mxu0 %v152_v28  ;;  %229 = vmatpush.msra.mxu3 %v183_v29  ;;  %v142_v47 = vld [vmem:[#allocation8 + $0x48] sm:$0xff]  ;;  %v176_v48 = vld [vmem:[#allocation8 + $0x158] sm:$0xff]  ;;  %v139_v49 = vld [vmem:[#allocation8 + $0x30] sm:$0xff] }
  0x24   :  { %269 = vmatpush.msrb.mxu1 %v184_v30  ;;  %210 = vmatpush.msra.mxu2 %v149_v31  ;;  %v173_v50 = vld [vmem:[#allocation8 + $0x140] sm:$0xff]  ;;  %v140_v51 = vld [vmem:[#allocation8 + $0x38] sm:$0xff]  ;;  %v174_v52 = vld [vmem:[#allocation8 + $0x148] sm:$0xff] }
  0x25   :  { %250 = vmatpush.msrb.mxu0 %v150_v32  ;;  %230 = vmatpush.msra.mxu3 %v181_v33  ;;  %v137_v53 = vld [vmem:[#allocation8 + $0x20] sm:$0xff]  ;;  %v171_v54 = vld [vmem:[#allocation8 + $0x130] sm:$0xff]  ;;  %v138_v55 = vld [vmem:[#allocation8 + $0x28] sm:$0xff] }
  0x26   :  { %270 = vmatpush.msrb.mxu1 %v182_v34  ;;  %211 = vmatpush.msra.mxu2 %v147_v35  ;;  %v172_v56 = vld [vmem:[#allocation8 + $0x138] sm:$0xff]  ;;  %v135_v57 = vld [vmem:[#allocation8 + $0x10] sm:$0xff]  ;;  %v169_v58 = vld [vmem:[#allocation8 + $0x120] sm:$0xff] }
  0x27   :  { %251 = vmatpush.msrb.mxu0 %v148_v36  ;;  %231 = vmatpush.msra.mxu3 %v179_v37  ;;  %v136_v59 = vld [vmem:[#allocation8 + $0x18] sm:$0xff]  ;;  %v170_v60 = vld [vmem:[#allocation8 + $0x128] sm:$0xff]  ;;  %v133_v61 = vld [vmem:[#allocation8] sm:$0xff] }
  0x28   :  { %271 = vmatpush.msrb.mxu1 %v180_v38  ;;  %212 = vmatpush.msra.mxu2 %v145_v39  ;;  %v167_v62 = vld [vmem:[#allocation8 + $0x110] sm:$0xff]  ;;  %v134_v63 = vld [vmem:[#allocation8 + $0x8] sm:$0xff]  ;;  %v168_v0 = vld [vmem:[#allocation8 + $0x118] sm:$0xff] }
  0x29   :  { %252 = vmatpush.msrb.mxu0 %v146_v40  ;;  %232 = vmatpush.msra.mxu3 %v177_v41  ;;  %v165_v1 = vld [vmem:[#allocation8 + $0x100] sm:$0xff]  ;;  %v166_v2 = vld [vmem:[#allocation8 + $0x108] sm:$0xff]  ;;  %v81_v3 = vld [vmem:[#allocation7] sm:$0x3] }
  0x2a   :  { %272 = vmatpush.msrb.mxu1 %v178_v42  ;;  %213 = vmatpush.msra.mxu2 %v143_v43  ;;  %v83_v4 = vperm.slane %v81_v3, 0  ;;  %v84_v5 = vperm.slane %v81_v3, 1  ;;  %v197_v12 = vld [vmem:[%s510_s4] sm:$0x3]  ;;  %s294_s4 = sshll.u32 %s511_s5, 4  ;;  %s295_s4 = int_to_ptr.hbm [resolvable:$true] %s294_s4 }
  0x2b   :  { %253 = vmatpush.msrb.mxu0 %v144_v44  ;;  %233 = vmatpush.msra.mxu3 %v175_v46  ;;  %v200_v13 = vperm.slane %v197_v12, 1  ;;  %v199_v18 = vperm.slane %v197_v12, 0 }
  0x2c   :  { %214 = vmatpush.msra.mxu2 %v141_v45  ;;  %273 = vmatpush.msrb.mxu1 %v176_v48 }
  0x2d   :  { %254 = vmatpush.msrb.mxu0 %v142_v47  ;;  %234 = vmatpush.msra.mxu3 %v173_v50 }
  0x2e   :  { %215 = vmatpush.msra.mxu2 %v139_v49  ;;  %274 = vmatpush.msrb.mxu1 %v174_v52 }
  0x2f   :  { %255 = vmatpush.msrb.mxu0 %v140_v51  ;;  %235 = vmatpush.msra.mxu3 %v171_v54 }
  0x30   :  { %216 = vmatpush.msra.mxu2 %v137_v53  ;;  %275 = vmatpush.msrb.mxu1 %v172_v56 }
  0x31   :  { %256 = vmatpush.msrb.mxu0 %v138_v55  ;;  %236 = vmatpush.msra.mxu3 %v169_v58 }
  0x32   :  { %217 = vmatpush.msra.mxu2 %v135_v57  ;;  %276 = vmatpush.msrb.mxu1 %v170_v60 }
  0x33   :  { %257 = vmatpush.msrb.mxu0 %v136_v59  ;;  %237 = vmatpush.msra.mxu3 %v167_v62 }
  0x34   :  { %218 = vmatpush.msra.mxu2 %v133_v61  ;;  %277 = vmatpush.msrb.mxu1 %v168_v0 }
  0x35   :  { %258 = vmatpush.msrb.mxu0 %v134_v63  ;;  %238 = vmatpush.msra.mxu3 %v165_v1 }
  0x36   :  { %278 = vmatpush.msrb.mxu1 %v166_v2 }
  0x92   :  { %v108_v6 = vpop.f32.mrf.mxu0 }
  0x93   :  { %v128_v7 = vpop.f32.mrf.mxu1  ;;  %v109_v8 = vadd.f32 %v108_v6, %v83_v4 }
  0x94   :  { %v129_v9 = vadd.f32 %v128_v7, %v84_v5 }
  0x95   :  { %315 = vtanh.f32 %v109_v8 }
  0x96   :  { %317 = vtanh.f32 %v129_v9 }
  0x9b   :  { %v316_v10 = vpop.eup %315 }
  0x9c   :  { %v318_v11 = vpop.eup %317  ;;  %219 = vmatmul.f32.vlgmr.msra.gmra.mxu2 %v316_v10  ;;  %259 = vmatmul.f32.vlgmr.msrb.gmra.mxu0 %v316_v10 }
  0x9d   :  { %239 = vmatmul.f32.vlgmr.msra.gmra.mxu3 %v318_v11  ;;  %279 = vmatmul.f32.vlgmr.msrb.gmra.mxu1 %v318_v11 }
 0x119   :  { %v260_v14 = vpop.f32.mrf.mxu0 }
 0x11a   :  { %v261_v15 = vadd.f32 %v260_v14, %v200_v13  ;;  %v280_v16 = vpop.f32.mrf.mxu1 }
 0x11c   :  { %v281_v17 = vadd.f32 %v280_v16, %v261_v15 }
 0x11e   :  { %319 = vtanh.f32 %v281_v17 }
 0x11f   :  { %v220_v19 = vpop.f32.mrf.mxu2 }
 0x120   :  { %v221_v20 = vadd.f32 %v220_v19, %v199_v18  ;;  %v240_v21 = vpop.f32.mrf.mxu3 }
 0x122   :  { %v241_v22 = vadd.f32 %v240_v21, %v221_v20 }
 0x124   :  { %v320_v23 = vpop.eup %319  ;;  %321 = vtanh.f32 %v241_v22 }
 0x125   :  { %286 = vst [vmem:[#allocation10 + $0x8] sm:$0xff] %v320_v23 }
 0x12a   :  { %v322_v24 = vpop.eup %321 }
 0x12b   :  { %285 = vst [vmem:[#allocation10] sm:$0xff] %v322_v24 }
 0x12c   :  { %297 = dma.vmem_to_hbm [thread:$0]  %s293_s14, 256, %s295_s4, [#allocation4]  }
 0x12d   :  { %449 = dma.done.wait [#allocation4], 256  }
 0x12e   :  { %450 = vsyncadd [#allocation4], 4294967040 }
 0x12f   :  { %302 = vsyncpa [#allocation3], 1 }
 0x130   :  { %303 = vsyncpa [#allocation6], 1 }
 0x131   :  { %304 = vsyncpa [#allocation9], 1 }
 0x132   :  { %305 = vsyncpa [#allocation4], 1 }

</bundles_post_ra>
